<compile_context>
chip_gen: v6e
topology: v6e:2x2x1
jax: 0.10.0
libtpu: 0.0.40
codegen_flags: <defaults>
</compile_context>

<pallas_src>
import functools
import math

import jax
import jax.numpy as jnp
import numpy as np
from jax.experimental import pallas as pl
from jax.experimental.pallas import tpu as pltpu


def _vertical_attention_kernel(x_ref, w_ref, b_ref, o_ref, *, out_channels):
    """Strip attention for a block of `nb` images.

    x_ref : (nb, C, H, W)  input feature-map block
    w_ref : (C, 3*O)       fused [Wq | Wk | Wv]^T   (resident across the grid)
    b_ref : (1, 3*O)       fused [bq | bk | bv]     (resident across the grid)
    o_ref : (nb, H, O)     compact attention output (W-broadcast happens
                           outside the kernel, mirroring torch's .expand)
    """
    nb, c, h, _ = x_ref.shape
    o = out_channels

    # AdaptiveMaxPool2d((H, 1)) with pooled H == x.shape[2]: max over width.
    # Pool in the input dtype; only the tiny strip is upcast to f32.
    strip = jnp.max(x_ref[...], axis=-1)                       # (nb, C, H)
    strip = jnp.swapaxes(strip, 1, 2).astype(jnp.float32)      # (nb, H, C)

    # Fused Q/K/V projection: one (nb*H, C) @ (C, 3O) matmul (+ bias).
    qkv = jnp.dot(strip.reshape(nb * h, c), w_ref[...],
                  preferred_element_type=jnp.float32)          # (nb*H, 3O)
    qkv = (qkv + b_ref[...]).reshape(nb, h, 3 * o)             # (nb, H, 3O)

    q = qkv[:, :, 0:o]                                          # (nb, H, O)
    k = qkv[:, :, o:2 * o]
    v = qkv[:, :, 2 * o:3 * o]

    # scores[n, h, j] = <Q[n,h,:], K[n,j,:]> / sqrt(O)  (lane-dim contraction)
    scores = jnp.einsum('nho,njo->nhj', q, k,
                        preferred_element_type=jnp.float32)    # (nb, H, H)
    scores = scores * jnp.float32(1.0 / math.sqrt(o))

    # Numerically stable softmax over the last axis.
    m = jnp.max(scores, axis=-1, keepdims=True)
    e = jnp.exp(scores - m)
    attn = e / jnp.sum(e, axis=-1, keepdims=True)

    # out[n, h, :] = attn[n, h, :] @ V[n]  ->  (nb, H, O), lane-dense O.
    out = jnp.einsum('nhj,njo->nho', attn, v,
                     preferred_element_type=jnp.float32)
    o_ref[...] = out.astype(o_ref.dtype)


def _choose_block_n(n, c, h, w, o, in_itemsize, out_itemsize,
                    budget_bytes=24 << 20):
    """Largest batch block whose double-buffered blocks fit a VMEM budget,
    preferring >=2 grid steps (megacore split) when the batch allows."""
    fits = []
    for d in range(1, n + 1):
        if n % d:
            continue
        need = 2 * (d * c * h * w * in_itemsize + d * h * o * out_itemsize)
        if need <= budget_bytes:
            fits.append(d)
    if not fits:
        return 1
    pref = [d for d in fits if n // d >= 2]
    return max(pref) if pref else max(fits)


def vertical_attention(x, wq, bq, wk, bk, wv, bv, H=None, W=None):
    """VerticalAttention(C, O).forward(x, H, W) for x of shape (N, C, H, W)."""
    assert x.ndim == 4
    n, c, hx, wx = x.shape
    if H is None:
        H = hx
    if W is None:
        W = wx
    if H != hx:
        # TODO(synk): general AdaptiveMaxPool2d with pooled H != x.shape[2]
        # (overlapping adaptive windows) is not implemented.
        raise NotImplementedError(
            "vertical_attention requires pooled H == x.shape[2]")

    o = wq.shape[0]
    assert wq.shape == (o, c) and wk.shape == (o, c) and wv.shape == (o, c)
    assert bq.shape == (o,) and bk.shape == (o,) and bv.shape == (o,)

    # Fuse the three Linear layers into one resident weight / bias, transposed
    # on the host so the in-kernel matmul is canonical A @ B.
    w_t = jnp.concatenate([wq, wk, wv], axis=0).T.astype(jnp.float32)      # (C, 3O)
    b_row = (jnp.concatenate([bq, bk, bv], axis=0)
             .reshape(1, 3 * o).astype(jnp.float32))                       # (1, 3O)

    in_itemsize = jnp.dtype(x.dtype).itemsize
    out_itemsize = in_itemsize
    nb = _choose_block_n(n, c, hx, wx, o, in_itemsize, out_itemsize)
    grid = (n // nb,)

    # Explicit VMEM limit: double-buffered input/output blocks + weights.
    need = (2 * (nb * c * hx * wx * in_itemsize + nb * hx * o * out_itemsize)
            + (c * 3 * o + 3 * o) * 4)
    vmem_limit = int(min(max(2 * need + (4 << 20), 16 << 20), 48 << 20))

    # Compact-output cost estimate (no W-broadcast traffic).
    cost = pl.CostEstimate(
        flops=int(n * (2 * hx * c * 3 * o + 4 * hx * hx * o + 5 * hx * hx)),
        transcendentals=int(n * hx * hx),
        bytes_accessed=int(x.size * in_itemsize
                           + n * hx * o * out_itemsize
                           + (c * 3 * o + 3 * o) * 4),
    )

    kernel = functools.partial(_vertical_attention_kernel, out_channels=o)
    out_nho = pl.pallas_call(
        kernel,
        out_shape=jax.ShapeDtypeStruct((n, hx, o), x.dtype),
        grid_spec=pltpu.PrefetchScalarGridSpec(
            num_scalar_prefetch=0,
            grid=grid,
            in_specs=[
                pl.BlockSpec((nb, c, hx, wx), lambda i: (i, 0, 0, 0)),
                pl.BlockSpec((c, 3 * o), lambda i: (0, 0)),   # resident weights
                pl.BlockSpec((1, 3 * o), lambda i: (0, 0)),   # resident bias
            ],
            out_specs=pl.BlockSpec((nb, hx, o), lambda i: (i, 0, 0)),
        ),
        compiler_params=pltpu.CompilerParams(
            dimension_semantics=("parallel",),
            vmem_limit_bytes=vmem_limit),
        cost_estimate=cost,
    )(x, w_t, b_row)

    # torch-equivalent layout plumbing + .expand OUTSIDE the kernel (XLA can
    # fuse this broadcast into the consumer instead of writing it to HBM).
    out = jnp.swapaxes(out_nho, 1, 2)[..., None]               # (N, O, H, 1)
    return jnp.broadcast_to(out, (n, o, hx, W))


# ---- pure-JAX reference (direct transcription of the PyTorch module) ----
def vertical_attention_ref(x, wq, bq, wk, bk, wv, bv):
    N, C, H, W = x.shape
    O = wq.shape[0]
    strip = jnp.max(x, axis=3)                    # AdaptiveMaxPool2d((H,1)) -> (N, C, H)
    strip = jnp.swapaxes(strip, 1, 2)             # (N, H, C)
    Q = strip @ wq.T + bq
    K = strip @ wk.T + bk
    V = strip @ wv.T + bv
    qk = jnp.einsum("nhc,njc->nhj", Q, K) / math.sqrt(O)
    attn = jax.nn.softmax(qk, axis=-1)
    qkv = jnp.einsum("nhj,njo->nho", attn, V)     # (N, H, O)
    qkv = jnp.swapaxes(qkv, 1, 2)[..., None]      # (N, O, H, 1)
    return jnp.broadcast_to(qkv, (N, O, H, W))


if __name__ == "__main__":
    N, C, O, H, W = 2, 4, 8, 16, 16               # channels=4, out_channels=8
    key = jax.random.PRNGKey(0)
    kx, k1, k2, k3, k4, k5, k6 = jax.random.split(key, 7)

    x = jax.random.normal(kx, (N, C, H, W), dtype=jnp.float32)
    bound = 1.0 / math.sqrt(C)                    # nn.Linear default init range
    wq = jax.random.uniform(k1, (O, C), jnp.float32, -bound, bound)
    bq = jax.random.uniform(k2, (O,), jnp.float32, -bound, bound)
    wk = jax.random.uniform(k3, (O, C), jnp.float32, -bound, bound)
    bk = jax.random.uniform(k4, (O,), jnp.float32, -bound, bound)
    wv = jax.random.uniform(k5, (O, C), jnp.float32, -bound, bound)
    bv = jax.random.uniform(k6, (O,), jnp.float32, -bound, bound)

    out = jax.block_until_ready(vertical_attention(x, wq, bq, wk, bk, wv, bv))
    ref = jax.block_until_ready(vertical_attention_ref(x, wq, bq, wk, bk, wv, bv))

    assert out.shape == ref.shape == (N, O, H, W) and out.dtype == ref.dtype
    np.testing.assert_allclose(np.asarray(out), np.asarray(ref),
                               rtol=1e-4, atol=1e-4)
    print("KERNEL_OK")
</pallas_src>

<mosaic_0001>
module attributes {stable_mosaic.version = 11 : i64} {
  func.func @_vertical_attention_kernel(%arg0: i32, %arg1: memref<1x4x16x16xf32, #tpu.memory_space<vmem>>, %arg2: memref<4x24xf32, #tpu.memory_space<vmem>>, %arg3: memref<1x24xf32, #tpu.memory_space<vmem>>, %arg4: memref<1x16x8xf32, #tpu.memory_space<vmem>>) attributes {dimension_semantics = [#tpu.dimension_semantics<parallel>], iteration_bounds = array<i64: 2>, scalar_prefetch = 0 : i64, scratch_operands = 0 : i64, tpu.core_type = #tpu.core_type<tc>, window_params = [{transform_indices = @transform_0, window_bounds = array<i64: 1, 4, 16, 16>}, {pipeline_mode = #tpu.pipeline_mode<synchronous>, transform_indices = @transform_1, window_bounds = array<i64: 4, 24>}, {pipeline_mode = #tpu.pipeline_mode<synchronous>, transform_indices = @transform_2, window_bounds = array<i64: 1, 24>}, {transform_indices = @transform_3, window_bounds = array<i64: 1, 16, 8>}]} {
    %c0 = arith.constant 0 : index
    %c0_0 = arith.constant 0 : index
    %c0_1 = arith.constant 0 : index
    %c0_2 = arith.constant 0 : index
    %0 = vector.load %arg1[%c0, %c0_0, %c0_1, %c0_2] : memref<1x4x16x16xf32, #tpu.memory_space<vmem>>, vector<1x4x16x16xf32>
    %cst = arith.constant dense<0xFF800000> : vector<1x4x16xf32>
    %1 = vector.multi_reduction <maximumf>, %0, %cst [3] : vector<1x4x16x16xf32> to vector<1x4x16xf32>
    %2 = tpu.transpose %1, [0, 2, 1] : vector<1x4x16xf32> -> vector<1x16x4xf32>
    %3 = vector.shape_cast %2 : vector<1x16x4xf32> to vector<16x4xf32>
    %c0_3 = arith.constant 0 : index
    %c0_4 = arith.constant 0 : index
    %4 = vector.load %arg2[%c0_3, %c0_4] : memref<4x24xf32, #tpu.memory_space<vmem>>, vector<4x24xf32>
    %cst_5 = arith.constant dense<0.000000e+00> : vector<16x24xf32>
    %5 = tpu.matmul %3, %4, %cst_5 {dimension_numbers = #tpu.dot_dimension_numbers<[1], [0], [0], [1], [0, 0, 1, 1], [], []>} : vector<16x4xf32>, vector<4x24xf32>, vector<16x24xf32> -> vector<16x24xf32>
    %c0_6 = arith.constant 0 : index
    %c0_7 = arith.constant 0 : index
    %6 = vector.load %arg3[%c0_6, %c0_7] : memref<1x24xf32, #tpu.memory_space<vmem>>, vector<1x24xf32>
    %7 = vector.broadcast %6 : vector<1x24xf32> to vector<16x24xf32>
    %8 = arith.addf %5, %7 : vector<16x24xf32>
    %9 = vector.shape_cast %8 : vector<16x24xf32> to vector<1x16x24xf32>
    %10 = vector.extract_strided_slice %9 {offsets = [0, 0, 0], sizes = [1, 16, 8], strides = [1, 1, 1]} : vector<1x16x24xf32> to vector<1x16x8xf32>
    %11 = vector.extract_strided_slice %9 {offsets = [0, 0, 8], sizes = [1, 16, 8], strides = [1, 1, 1]} : vector<1x16x24xf32> to vector<1x16x8xf32>
    %12 = vector.extract_strided_slice %9 {offsets = [0, 0, 16], sizes = [1, 16, 8], strides = [1, 1, 1]} : vector<1x16x24xf32> to vector<1x16x8xf32>
    "tpu.trace_start"() <{level = 10 : i32, message = "nho,njo->nhj"}> : () -> ()
    %cst_8 = arith.constant dense<0.000000e+00> : vector<1x16x16xf32>
    %13 = tpu.matmul %10, %11, %cst_8 {dimension_numbers = #tpu.dot_dimension_numbers<[2], [2], [1], [1], [0, 0, 0, 1, 1, 1], [0], [0]>} : vector<1x16x8xf32>, vector<1x16x8xf32>, vector<1x16x16xf32> -> vector<1x16x16xf32>
    "tpu.trace_stop"() : () -> ()
    %cst_9 = arith.constant 0.353553385 : f32
    %14 = vector.broadcast %cst_9 : f32 to vector<1x16x16xf32>
    %15 = arith.mulf %13, %14 : vector<1x16x16xf32>
    %cst_10 = arith.constant dense<0xFF800000> : vector<1x16xf32>
    %16 = vector.multi_reduction <maximumf>, %15, %cst_10 [2] : vector<1x16x16xf32> to vector<1x16xf32>
    %17 = vector.shape_cast %16 : vector<1x16xf32> to vector<1x16x1xf32>
    %18 = vector.broadcast %17 : vector<1x16x1xf32> to vector<1x16x16xf32>
    %19 = arith.subf %15, %18 : vector<1x16x16xf32>
    %20 = math.exp %19 : vector<1x16x16xf32>
    %cst_11 = arith.constant dense<0.000000e+00> : vector<1x16xf32>
    %21 = vector.multi_reduction <add>, %20, %cst_11 [2] : vector<1x16x16xf32> to vector<1x16xf32>
    %22 = vector.shape_cast %21 : vector<1x16xf32> to vector<1x16x1xf32>
    %23 = vector.broadcast %22 : vector<1x16x1xf32> to vector<1x16x16xf32>
    %24 = arith.divf %20, %23 : vector<1x16x16xf32>
    "tpu.trace_start"() <{level = 10 : i32, message = "nhj,njo->nho"}> : () -> ()
    %cst_12 = arith.constant dense<0.000000e+00> : vector<1x16x8xf32>
    %25 = tpu.matmul %24, %12, %cst_12 {dimension_numbers = #tpu.dot_dimension_numbers<[2], [1], [1], [2], [0, 0, 0, 1, 1, 2], [0], [0]>} : vector<1x16x16xf32>, vector<1x16x8xf32>, vector<1x16x8xf32> -> vector<1x16x8xf32>
    "tpu.trace_stop"() : () -> ()
    %c0_13 = arith.constant 0 : index
    %c0_14 = arith.constant 0 : index
    %c0_15 = arith.constant 0 : index
    %26 = vector.load %arg4[%c0_13, %c0_14, %c0_15] : memref<1x16x8xf32, #tpu.memory_space<vmem>>, vector<1x16x8xf32>
    tpu.vector_store %arg4[%c0_13, %c0_14, %c0_15], %25 {strides = array<i32>} : memref<1x16x8xf32, #tpu.memory_space<vmem>>, vector<1x16x8xf32>,
    return
  }
  func.func @transform_0(%arg0: i32) -> (i32, i32, i32, i32) {
    %c0_i32 = arith.constant 0 : i32
    %c0_i32_0 = arith.constant 0 : i32
    %c0_i32_1 = arith.constant 0 : i32
    %c0_i32_2 = arith.constant 0 : i32
    return %arg0, %c0_i32, %c0_i32_0, %c0_i32_1 : i32, i32, i32, i32
  }
  func.func @transform_1(%arg0: i32) -> (i32, i32) {
    %c0_i32 = arith.constant 0 : i32
    %c0_i32_0 = arith.constant 0 : i32
    %c0_i32_1 = arith.constant 0 : i32
    return %c0_i32, %c0_i32_0 : i32, i32
  }
  func.func @transform_2(%arg0: i32) -> (i32, i32) {
    %c0_i32 = arith.constant 0 : i32
    %c0_i32_0 = arith.constant 0 : i32
    %c0_i32_1 = arith.constant 0 : i32
    return %c0_i32, %c0_i32_0 : i32, i32
  }
  func.func @transform_3(%arg0: i32) -> (i32, i32, i32) {
    %c0_i32 = arith.constant 0 : i32
    %c0_i32_0 = arith.constant 0 : i32
    %c0_i32_1 = arith.constant 0 : i32
    return %arg0, %c0_i32, %c0_i32_0 : i32, i32, i32
  }
}

</mosaic_0001>

<bundles_post_ra>
// kernel: tpu_custom_call.1
= control target key start
LH: loop header
LB: loop body
LE: loop exit
PB: predicated region body
PF: predicated region fallthrough
CT: control target
= control target key end

     0   :  { %8 = vsyncpa [#allocation3], 0  ;;  %s1090_s0 = inlined_call_operand.hbm [shape: f32[2,4,16,16], index: 0, kind: input, shape index: {}]   ;;  %s1091_s1 = inlined_call_operand.hbm [shape: f32[4,24], index: 1, kind: input, shape index: {}]   ;;  %s1092_s2 = inlined_call_operand.vmem [shape: f32[1,24], index: 2, kind: input, shape index: {}]   ;;  %s1093_s3 = inlined_call_operand.vmem [shape: f32[2,16,8], index: 3, kind: output, shape index: {}]  }
   0x1   :  { %10 = vsyncpa [#allocation3 + $0x1], 0 }
   0x2   :  { %11 = vsyncpa [#allocation5], 0  ;;  %s937_s12 = smov 0   ;;  %s939_s13 = smov 0  }
   0x3   :  { %s941_s14 = smov 0   ;;  %s943_s15 = smov 0  }
   0x4 LB: > { %s956_s16 = sadd.s32 4294967295, %s909_s15   ;;  %s959_s17 = sadd.s32 1, %s909_s15   ;;  %s909_s15 = sphi %s943_s15, %s1108_s15   ;;  %s905_s14 = sphi %s941_s14, %s1107_s14   ;;  %s901_s13 = sphi %s939_s13, %s1106_s13   ;;  %s897_s12 = sphi %s937_s12, %s1105_s12  }
   0x5   : > { %s21_s18 = ssub.s32 %s909_s15, %s959_s17  ;;  %s24_s19 = sadd.s32 1, %s905_s14 }
   0x6   : > { %p22_p0 = scmp.eq.s32.totalorder %s21_s18, 0  ;;  %p31_p1 = scmp.ne.s32.totalorder %s905_s14, %s901_s13 }
   0x7   : > { %p32_p2 = scmp.eq.s32.totalorder %s909_s15, 0  ;;  %p37_p3 = scmp.ne.s32.totalorder %s901_s13, %s897_s12 }
   0x8   : > { %s969_s20 = scalar_select %p22_p0, %s905_s14, %s24_s19  }
   0x9   : > { %p971_p4 = por %p32_p2, %p31_p1  ;;  %p1096_p5 = scmp.eq.s32.totalorder %s956_s16, 0 }
   0xa   : > { %p699_p6 = scmp.ge.s32.totalorder %s909_s15, 1  ;;  %p116_p7 = scmp.lt.s32.totalorder %s909_s15, 3 }
   0xb   : > { %p980_p8 = por %p1096_p5, %p37_p3  ;;  %s911_s24 = smov [#allocation4]  }
   0xc   : > { %p984_p9 = pnand %p699_p6, %p116_p7  ;;  %s129_s25 = sshll.u32 %s911_s24, 4  ;;  %s130_s25 = int_to_ptr.vmem [resolvable:$true] %s129_s25 }
   0xd   : > { %s1098_s22 = scalar_select %p980_p8, 1, 0 }
   0xe   : > { %s1099_s23 = scalar_select %p984_p9, 1, 0 }
   0xf   : > { %p760_p10 = pneg %p984_p9  ;;  %p769_p11 = scmp.lt.s32.totalorder %s909_s15, 2 }
  0x10   : > { %s143_s26 = sand.u32 1, %s905_s14   ;;  %s828_s29 = scalar_lea.vmem %s130_s25, 64 }
  0x11   : > { %p761_p12 = pnand %p760_p10, %p1096_p5  ;;  %p996_p13 = pnand %p769_p11, %p971_p4 }
  0x12   : > { %s702_s28 = sshll.u32 %s143_s26, 6  ;;  %p829_p1 = scmp.ne.s32.totalorder %s130_s25, %s828_s29 }
  0x13   : > { %p819_p0 = pneg %p761_p12  ;;  %p836_p6 = scmp.lt.s32.totalorder %s130_s25, %s130_s25 }
  0x14   : > { %p837_p7 = scmp.lt.s32.totalorder %s828_s29, %s828_s29 }
  0x15   : > { %p831_p2 = pnand %p829_p1, %p819_p0 }
  0x16   : > { %p838_p8 = por %p837_p7, %p836_p6 }
  0x17   : > { %p832_p3 = pneg %p831_p2 }
  0x19   : > { %p839_p9 = pnand %p838_p8, %p832_p3 }
  0x1b   : > { %842 = shalt.err (!%p839_p9)
}
  0x1c   : > { %763 = dma.hbm_to_vmem [thread:$0]  (!%p761_p12), %s1091_s1, 64, %s130_s25, [#allocation5]  }
  0x1d   : > { %s722_s5 = sshll.u32 %s909_s15, 10  ;;  %s147_s9 = scalar_lea.vmem [#allocation2], %s702_s28 }
  0x1e   : > { %s1007_s8 = scalar_lea.hbm %s1090_s0, %s722_s5  ;;  %s154_s10 = sshll.u32 %s147_s9, 4  ;;  %s1009_s10 = int_to_ptr.vmem [resolvable:$true] %s154_s10 }
  0x1f   : > { %s1011_s11 = scalar_lea.sflag [#allocation3], %s143_s26  ;;  %s843_s12 = scalar_lea.hbm %s1007_s8, 1024 }
  0x20   : > { %p844_p4 = scmp.ne.s32.totalorder %s1007_s8, %s843_s12  ;;  %p845_p8 = pneg %p996_p13 }
  0x21   : > { %s848_s19 = scalar_lea.hbm %s1090_s0, 2048  ;;  %p849_p11 = scmp.lt.s32.totalorder %s1007_s8, %s1090_s0 }
  0x22   : > { %p846_p9 = pnand %p845_p8, %p844_p4  ;;  %p850_p12 = scmp.lt.s32.totalorder %s848_s19, %s843_s12 }
  0x24   : > { %p847_p10 = pneg %p846_p9  ;;  %p851_p0 = por %p850_p12, %p849_p11 }
  0x26   : > { %p852_p1 = pnand %p851_p0, %p847_p10 }
  0x28   : > { %855 = shalt.err (!%p852_p1)
}
  0x29   : > { %s856_s25 = scalar_lea.vmem %s1009_s10, 1024  ;;  %s912_s26 = smov [#allocation2]  }
  0x2a   : > { %p857_p2 = scmp.ne.s32.totalorder %s1009_s10, %s856_s25  ;;  %s861_s28 = sshll.u32 %s912_s26, 4  ;;  %s862_s28 = int_to_ptr.vmem [resolvable:$false] %s861_s28 }
  0x2b   : > { %s863_s29 = scalar_lea.vmem %s862_s28, 2048  ;;  %p864_p7 = scmp.lt.s32.totalorder %s1009_s10, %s862_s28 }
  0x2c   : > { %p859_p3 = pnand %p857_p2, %p845_p8  ;;  %p865_p4 = scmp.lt.s32.totalorder %s863_s29, %s856_s25 }
  0x2e   : > { %p860_p6 = pneg %p859_p3  ;;  %p866_p9 = por %p865_p4, %p864_p7 }
  0x30   : > { %p867_p5 = pnand %p866_p9, %p860_p6 }
  0x32   : > { %870 = shalt.err (!%p867_p5)
}
  0x33   : > { %s913_s30 = smov 128   ;;  %s914_s4 = smov 8  }
  0x34   : > { %767 = dma.hbm_to_vmem [thread:$0]  (!%p996_p13), %s1007_s8, 1024, %s1009_s10, %s1011_s11, %s913_s30, %s913_s30, %s914_s4  }
  0x35   : > { %p1101_p8 = scmp.ne.s32.totalorder %s1099_s23, 0 }
  0x36   : > { %s168_s5 = sand.u32 (!%p1101_p8), 1, %s901_s13   ;;  %p1102_p10 = scmp.ne.s32.totalorder (!%p1101_p8), %s1098_s22, 0 }
  0x37   : > { %166 = sbr.rel (%p1101_p8) target bundleno = 1375 (0x55f), region = 32  ;;  %s706_s6 = sshll.u32 (!%p1101_p8), %s168_s5, 6 }
  0x38   : > { %s169_s7 = scalar_lea.sflag (!%p1101_p8), [#allocation3], %s168_s5  ;;  %s172_s9 = scalar_lea.vmem (!%p1101_p8), [#allocation2], %s706_s6 }
  0x3c   : > { %888 = dma.done.wait (%p1102_p10), %s169_s7, 1024  }
  0x3d   : > { %890 = vsyncadd (%p1102_p10), %s169_s7, 4294966272  ;;  %p1103_p5 = scmp.eq.s32.totalorder %s956_s16, 0 }
  0x3f   : > { %892 = dma.done.wait (%p1103_p5), [#allocation5], 64   ;;  %p1104_p11 = pmov %p1103_p5 }
  0x40   : > { %vm212_vm0 = vcmask 130048   ;;  %v206_v0 = vld [vmem:[%s172_s9 + $0x10] sm:$0xff]  ;;  %v204_v1 = vld [vmem:[%s172_s9] sm:$0xff]  ;;  %v207_v2 = vld [vmem:[%s172_s9 + $0x18] sm:$0xff]  ;;  %v245_v16 = vlaneseq  ;;  %vm256_vm1 = vcmask 130112   ;;  %vm285_vm2 = vcmask 1041409  }
  0x41   : > { %894 = vsyncadd (%p1104_p11), [#allocation5], 4294967232  ;;  %v219_v3 = vsel %vm212_vm0, %v206_v0, -inf  ;;  %v213_v4 = vsel %vm212_vm0, %v204_v1, -inf  ;;  %v205_v5 = vld [vmem:[%s172_s9 + $0x8] sm:$0xff]  ;;  %v222_v6 = vsel %vm212_vm0, %v207_v2, -inf }
  0x42   : > { %220 = vmax.xlane.f32.xlu1 %v219_v3  ;;  %214 = vmax.xlane.f32.xlu0 %v213_v4  ;;  %v216_v7 = vsel %vm212_vm0, %v205_v5, -inf  ;;  %v209_v8 = vld [vmem:[%s172_s9 + $0x28] sm:$0xff]  ;;  %v208_v9 = vld [vmem:[%s172_s9 + $0x20] sm:$0xff]  ;;  %v211_v12 = vld [vmem:[%s172_s9 + $0x38] sm:$0xff]  ;;  %v246_v17 = vand.u32 127, %v245_v16  ;;  %v248_v21 = vshrl.u32 %v245_v16, 7 }
  0x43   : > { %v228_v10 = vsel %vm212_vm0, %v209_v8, -inf  ;;  %v225_v11 = vsel %vm212_vm0, %v208_v9, -inf  ;;  %v210_v13 = vld [vmem:[%s172_s9 + $0x30] sm:$0xff]  ;;  %v234_v14 = vsel %vm212_vm0, %v211_v12, -inf  ;;  %vm287_vm3 = vcmask 1042434   ;;  %s915_s27 = smov 120  }
  0x44   : > { %v231_v15 = vsel %vm212_vm0, %v210_v13, -inf  ;;  %v251_v18 = vadd.s32 4294967288, %v246_v17  ;;  %v249_v25 = vsub.s32 %v246_v17, %v248_v21  ;;  %vm289_vm4 = vcmask 1043459   ;;  %v324_v42 = vld [vmem:[#allocation4] sm:$0xf]  ;;  %s916_s8 = smov 112  }
  0x45   : > { %vm339_vm5 = vcmask 1043456   ;;  %vm332_vm6 = vcmask 31744   ;;  %v710_v48 = vld [vmem:[%s1092_s2] ss:$0 sm:$0xff]  ;;  %vm424_vm7 = vcmask 64512   ;;  %p199_p13 = scmp.lt.s32.totalorder %s956_s16, 1 }
  0x46   : > { %223 = vmax.xlane.f32.xlu1 %v222_v6  ;;  %217 = vmax.xlane.f32.xlu0 %v216_v7  ;;  %v254_v22 = vsub.s32 %v251_v18, %v248_v21 }
  0x47   : > { %735 = vmatprep.subr.msk.mxu0 %vm339_vm5, %v324_v42  ;;  %s1110_s16 = smov (!%p199_p13, %s956_s16), 1 }
  0x48   : > { %736 = vmatpush3.msk.msra.mxu0 %vm339_vm5, %v324_v42  ;;  %s723_s10 = sshll.u32 %s1110_s16, 4 }
  0x49   : > { %s203_s15 = scalar_lea.vmem %s1093_s3, %s723_s10 }
  0x4a   : > { %229 = vmax.xlane.f32.xlu1 %v228_v10  ;;  %226 = vmax.xlane.f32.xlu0 %v225_v11 }
  0x4e   : > { %235 = vmax.xlane.f32.xlu1 %v234_v14  ;;  %232 = vmax.xlane.f32.xlu0 %v231_v15 }
  0xcb   : > { %v221_v19 = vpop.xlane.xlu1 %220  ;;  %v215_v20 = vpop.xlane.xlu0 %214 }
  0xcc   : > { %v261_v30 = vrot.slane %v221_v19, %v249_v25  ;;  %v250_v31 = vrot.slane %v215_v20, %v249_v25 }
  0xcf   : > { %v224_v23 = vpop.xlane.xlu1 %223  ;;  %v218_v24 = vpop.xlane.xlu0 %217 }
  0xd0   : > { %v265_v26 = vrot.slane %v224_v23, %v254_v22  ;;  %v255_v27 = vrot.slane %v218_v24, %v254_v22 }
  0xd2   : > { %v266_v34 = vsel %vm256_vm1, %v265_v26, %v261_v30  ;;  %v257_v35 = vsel %vm256_vm1, %v255_v27, %v250_v31 }
  0xd3   : > { %v230_v28 = vpop.xlane.xlu1 %229  ;;  %v227_v29 = vpop.xlane.xlu0 %226  ;;  %v286_v41 = vsel %vm285_vm2, %v266_v34, %v257_v35 }
  0xd4   : > { %v274_v32 = vrot.slane %v230_v28, %v254_v22  ;;  %v270_v33 = vrot.slane %v227_v29, %v249_v25 }
  0xd6   : > { %v275_v38 = vsel %vm256_vm1, %v274_v32, %v270_v33 }
  0xd7   : > { %v236_v36 = vpop.xlane.xlu1 %235  ;;  %v233_v37 = vpop.xlane.xlu0 %232  ;;  %v288_v44 = vsel %vm287_vm3, %v275_v38, %v286_v41 }
  0xd8   : > { %v283_v39 = vrot.slane %v236_v36, %v254_v22  ;;  %v279_v40 = vrot.slane %v233_v37, %v249_v25 }
  0xda   : > { %v284_v43 = vsel %vm256_vm1, %v283_v39, %v279_v40 }
  0xdb   : > { %v290_v45 = vsel %vm289_vm4, %v284_v43, %v288_v44 }
  0xdc   : > { %292 = vxpose.xlu0.b32.start.end [1/1] (short) (narrow) %v290_v45, 16 }
 0x158   : > { %v308_v46 = vpop.trf.xlu0 }
 0x159   : > { %737 = vmatprep.mubr.msk.f32.mxu0 %vm332_vm6, %v308_v46 }
 0x15c   : > { %v309_v47 = vpop.trf.xlu0 }
 0x15d   : > { %738 = vmatmul.mubr.msk.f32.vlgmr.msra.gmra.mxu0 %vm332_vm6, %v309_v47 }
 0x21d   : > { %v739_v49 = vpop.f32.mrf.mxu0 }
 0x21e   : > { %v415_v50 = vadd.f32 %v739_v49, %v710_v48 }
 0x21f   : > { %v409_v51 = vpop.f32.mrf.mxu0 }
 0x220   : > { %v410_v52 = vadd.f32 %v710_v48, %v409_v51  ;;  %422 = vrot.lane.b32.xlu1 %v415_v50, %s915_s27 }
 0x222   : > { %744 = vmatprep.mubr.msk.f32.mxu1 %vm424_vm7, %v410_v52 }
 0x224   : > { %420 = vrot.lane.b32.xlu1 %v410_v52, %s915_s27 }
 0x292   : > { %v423_v53 = vpop.permute.xlu1 %422 }
 0x293   : > { %740 = vmatprep.subr.msk.mxu1 %vm424_vm7, %v423_v53 }
 0x294   : > { %741 = vmatpush3.xpose.msk.msra.mxu1 %vm424_vm7, %v423_v53 }
 0x296   : > { %v421_v54 = vpop.permute.xlu1 %420 }
 0x297   : > { %742 = vmatprep.subr.msk.mxu1 %vm424_vm7, %v421_v54 }
 0x298   : > { %743 = vmatpush3.xpose.msk.msra.mxu1 %vm424_vm7, %v421_v54 }
 0x29b   : > { %745 = vmatmul.mubr.msk.f32.vlgmr.msra.gmra.mxu1 %vm424_vm7, %v415_v50 }
 0x35b   : > { %v746_v55 = vpop.f32.mrf.mxu1 }
 0x35c   : > { %v509_v56 = vmul.f32 0.35355338, %v746_v55 }
 0x35d   : > { %v499_v57 = vpop.f32.mrf.mxu1 }
 0x35e   : > { %v508_v58 = vmul.f32 0.35355338, %v499_v57  ;;  %v513_v59 = vsel %vm212_vm0, %v509_v56, -inf }
 0x35f   : > { %514 = vmax.xlane.f32.xlu0 %v513_v59 }
 0x360   : > { %v510_v60 = vsel %vm212_vm0, %v508_v58, -inf }
 0x361   : > { %511 = vmax.xlane.f32.xlu1 %v510_v60 }
 0x372   : > { %534 = vrot.lane.b32.xlu1 %v415_v50, %s916_s8 }
 0x3e8   : > { %v515_v61 = vpop.xlane.xlu0 %514 }
 0x3e9   : > { %v517_v62 = vsub.f32 %v509_v56, %v515_v61 }
 0x3ea   : > { %v512_v63 = vpop.xlane.xlu1 %511 }
 0x3eb   : > { %v520_v0 = vmul.f32 1.442695, %v517_v62  ;;  %v516_v1 = vsub.f32 %v508_v58, %v512_v63 }
 0x3ed   : > { %809 = vpow2.f32 %v520_v0  ;;  %v518_v2 = vmul.f32 1.442695, %v516_v1 }
 0x3ee   : > { %v535_v3 = vpop.permute.xlu1 %534 }
 0x3ef   : > { %811 = vpow2.f32 %v518_v2  ;;  %747 = vmatprep.subr.mxu0 %v535_v3 }
 0x3f0   : > { %748 = vmatpush3.msra.mxu0 %v535_v3 }
 0x3fa   : > { %v810_v4 = vpop.eup %809 }
 0x3fb   : > { %v525_v5 = vsel %vm212_vm0, %v810_v4, 0.0 }
 0x3fc   : > { %v812_v6 = vpop.eup %811  ;;  %526 = vadd.xlane.f32.xlu1 %v525_v5 }
 0x3fd   : > { %v522_v7 = vsel %vm212_vm0, %v812_v6, 0.0 }
 0x400   : > { %523 = vadd.xlane.f32.xlu1 %v522_v7 }
 0x411   : > { %532 = vrot.lane.b32.xlu1 %v410_v52, %s916_s8 }
 0x485   : > { %v527_v8 = vpop.xlane.xlu1 %526 }
 0x486   : > { %813 = vrcp.f32 %v527_v8 }
 0x489   : > { %v524_v9 = vpop.xlane.xlu1 %523 }
 0x48a   : > { %815 = vrcp.f32 %v524_v9 }
 0x48d   : > { %v533_v10 = vpop.permute.xlu1 %532 }
 0x48e   : > { %749 = vmatprep.subr.mxu0 %v533_v10 }
 0x48f   : > { %750 = vmatpush3.msra.mxu0 %v533_v10 }
 0x493   : > { %v814_v11 = vpop.eup %813 }
 0x494   : > { %v531_v14 = vmul.f32 %v814_v11, %v810_v4 }
 0x497   : > { %v816_v12 = vpop.eup %815 }
 0x498   : > { %v529_v13 = vmul.f32 %v816_v12, %v812_v6 }
 0x49a   : > { %751 = vmatprep.mubr.msk.f32.mxu0 %vm212_vm0, %v529_v13 }
 0x49b   : > { %752 = vmatmul.mubr.msk.f32.vlgmr.msra.gmra.mxu0 %vm212_vm0, %v531_v14 }
 0x55b   : > { %v753_v15 = vpop.f32.mrf.mxu0 }
 0x55c   : > { %620 = vst.msk [vmem:[%s203_s15 + $0x8] sm:$0xff] %vm424_vm7, %v753_v15 }
 0x55d   : > { %v610_v16 = vpop.f32.mrf.mxu0 }
 0x55e   : > { %619 = vst.msk [vmem:[%s203_s15] sm:$0xff] %vm424_vm7, %v610_v16 }
 0x55f PF: > { %p14_p12 = scmp.ge.s32.totalorder %s959_s17, 4   ;;  %s1105_s12 = smov %s901_s13 }
 0x560   : > { %s1106_s13 = smov %s905_s14  ;;  %s1107_s14 = smov %s969_s20 }
 0x561   : > { %s1108_s15 = smov %s959_s17  ;;  %16 = sbr.rel (!%p14_p12) target bundleno = 4 (0x4), region = 76 }
 0x566   :  { %642 = vsyncpa [#allocation3], 1 }
 0x567   :  { %644 = vsyncpa [#allocation3 + $0x1], 1 }
 0x568   :  { %645 = vsyncpa [#allocation5], 1 }

</bundles_post_ra>
